<compile_context>
chip_gen: v7x
topology: tpu7x:2x2x1
jax: 0.10.0
libtpu: 0.0.40
codegen_flags: <defaults>
</compile_context>

<pallas_src>
import functools

import jax
import jax.numpy as jnp
from jax.experimental import pallas as pl
from jax.experimental.pallas import tpu as pltpu


def _round_up(x, m):
    return ((x + m - 1) // m) * m


def _chip_plan():
    """Generation-aware knobs: (attention tile, vmem limit bytes, exp dtype).

    v5e/v6e: 128 MiB VMEM -> 1024 tile amortizes the ~0.35 us/grid-step cost.
    v7x: 64 MiB VMEM per TensorCore -> keep 512 and a <=48 MiB scoped limit.
    bf16 exp only where the EUP supports it (v6e/v7x); f32 elsewhere/unknown.
    """
    default = (512, 32 * 1024 * 1024, jnp.float32)
    try:
        kind = jax.devices()[0].device_kind.lower()
    except Exception:  # pragma: no cover - no TPU visible at trace time
        return default
    if "v7" in kind:
        return 512, 48 * 1024 * 1024, jnp.bfloat16
    if "v6" in kind:
        return 1024, 64 * 1024 * 1024, jnp.bfloat16
    if "v5" in kind:
        return 1024, 64 * 1024 * 1024, jnp.float32
    return default


# ---------------------------------------------------------------------------
# Kernel 1: projection.  One MXU matmul gives both
#   h = x @ W            (node features, all heads, bf16 out)
#   a = x @ (W @ [A_src | A_dst])   (per-node attention coefficients, f32 out)
# ---------------------------------------------------------------------------
def _proj_kernel(x_ref, w_ref, h_ref, a_ref, *, hc):
    out = jnp.dot(x_ref[...], w_ref[...], preferred_element_type=jnp.float32)
    h_ref[...] = out[:, :hc].astype(h_ref.dtype)
    a_ref[...] = out[:, hc:]


def _project(x_bf16, w_comb_bf16, *, hc, block_rows, vmem_limit):
    n, fin = x_bf16.shape
    tot = w_comb_bf16.shape[1]
    two_h = tot - hc
    return pl.pallas_call(
        functools.partial(_proj_kernel, hc=hc),
        grid=(n // block_rows,),
        in_specs=[
            pl.BlockSpec((block_rows, fin), lambda m: (m, 0)),
            pl.BlockSpec((fin, tot), lambda m: (0, 0)),
        ],
        out_specs=[
            pl.BlockSpec((block_rows, hc), lambda m: (m, 0)),
            pl.BlockSpec((block_rows, two_h), lambda m: (m, 0)),
        ],
        out_shape=[
            jax.ShapeDtypeStruct((n, hc), jnp.bfloat16),
            jax.ShapeDtypeStruct((n, two_h), jnp.float32),
        ],
        compiler_params=pltpu.CompilerParams(
            dimension_semantics=("parallel",),
            vmem_limit_bytes=vmem_limit),
    )(x_bf16, w_comb_bf16)


# ---------------------------------------------------------------------------
# Kernel 2: tiled attention, online softmax over src-node column tiles with a
# scalar-prefetched block-sparsity skip.
# ---------------------------------------------------------------------------
def _attn_kernel(nnz_ref, adj_ref, adst_ref, asrc_ref, h_ref, bias_ref,
                 out_ref, m_sc, acc_sc,
                 *, heads, out_ch, concat, apply_elu, negative_slope,
                 exp_dtype):
    i = pl.program_id(0)
    j = pl.program_id(1)

    @pl.when(j == 0)
    def _init():
        m_sc[...] = jnp.full_like(m_sc, -1e30)
        acc_sc[...] = jnp.zeros_like(acc_sc)

    # Block-sparse skip: tiles with zero edges leave m/acc untouched, which is
    # exactly what processing them would do (their p-contributions would be
    # wiped by scale==0 once a real edge fixes the running max).
    @pl.when(nnz_ref[i, j] > 0)
    def _compute():
        # Additive mask, hoisted out of the head loop (one select per tile).
        mask_bias = jnp.where(adj_ref[...] > 0, 0.0, -1e30)      # [BI, BJ] f32
        slope = jnp.float32(negative_slope)
        for hd in range(heads):                 # heads tiny -> static unroll
            # e[i, j] = leaky_relu(a_dst[i] + a_src[j]); non-edges -> ~-1e30.
            e = adst_ref[hd] + asrc_ref[hd]     # [BI,1] + [1,BJ] -> [BI,BJ]
            e = jnp.maximum(e, slope * e)       # leaky_relu = mul + max
            e = e + mask_bias

            m_old = m_sc[hd]                                        # [BI, 1]
            m_new = jnp.maximum(m_old, jnp.max(e, axis=-1, keepdims=True))
            p = jnp.exp((e - m_new).astype(exp_dtype))  # bf16 EUP on v6e/v7x
            scale = jnp.exp(m_old - m_new)                          # [BI, 1]

            # PV matmul.  h carries a trailing ones column, so column C of the
            # result is sum_j p (softmax denominator) — no XLU lane reduction.
            pv = jnp.dot(p.astype(h_ref.dtype), h_ref[hd],
                         preferred_element_type=jnp.float32)        # [BI, C+1]
            acc_sc[hd] = scale * acc_sc[hd] + pv
            m_sc[hd] = m_new

    @pl.when(j == pl.num_programs(1) - 1)
    def _finalize():
        acc = acc_sc[...]                             # [H, BI, C+1]
        l = acc[:, :, out_ch:out_ch + 1]              # softmax denominator
        safe_l = jnp.where(l > 0.0, l, 1.0)           # edgeless (padded) rows
        inv_l = pl.reciprocal(safe_l, approx=True)
        num = acc[:, :, :out_ch] * inv_l              # [H, BI, C]
        if concat:
            out = jnp.concatenate([num[hd] for hd in range(heads)], axis=-1)
        else:
            out = num[0]
            for hd in range(1, heads):
                out = out + num[hd]
            out = out * jnp.float32(1.0 / heads)
        out = out + bias_ref[...]                     # bias hoisted, once
        if apply_elu:
            out = jnp.where(out > 0, out, jnp.exp(jnp.minimum(out, 0.0)) - 1.0)
        out_ref[...] = out.astype(out_ref.dtype)      # single lane-dense store


def gat_conv(x_pad, adj_pad, block_nnz, w, att_src, att_dst, bias, *, heads,
             out_ch, concat, apply_elu, tile, vmem_limit, exp_dtype,
             out_dtype):
    """One GATConv layer on row-padded inputs (x_pad: [Np, Fin], adj int8 [Np, Np])."""
    n_pad = x_pad.shape[0]
    hc = heads * out_ch
    out_dim = hc if concat else out_ch
    nb = n_pad // tile

    # Block-diagonal stack [A_src | A_dst] of shape (H*C, 2H), folded into the
    # projection weight in f32 (no second in-kernel matmul, no double bf16
    # rounding of h before computing a).
    eye = jnp.eye(heads, dtype=jnp.float32)
    a_src_bd = (att_src[:, :, None] * eye[:, None, :]).reshape(hc, heads)
    a_dst_bd = (att_dst[:, :, None] * eye[:, None, :]).reshape(hc, heads)
    w_f32 = w.astype(jnp.float32)
    w_a = w_f32 @ jnp.concatenate([a_src_bd, a_dst_bd], axis=1)     # (Fin, 2H)
    w_comb = jnp.concatenate([w_f32, w_a], axis=1).astype(jnp.bfloat16)

    h, a = _project(x_pad.astype(jnp.bfloat16), w_comb, hc=hc,
                    block_rows=tile, vmem_limit=vmem_limit)

    # Head-major source values, augmented with a ones column: [H, Np, C+1].
    h_hm = h.reshape(n_pad, heads, out_ch).transpose(1, 0, 2)
    h_aug = jnp.concatenate(
        [h_hm, jnp.ones((heads, n_pad, 1), jnp.bfloat16)], axis=-1)
    a_src_hm = a[:, :heads].T.reshape(heads, 1, n_pad)   # lanes   = src nodes
    a_dst_hm = a[:, heads:].T.reshape(heads, n_pad, 1)   # sublanes = dst nodes

    kernel = functools.partial(
        _attn_kernel, heads=heads, out_ch=out_ch, concat=concat,
        apply_elu=apply_elu, negative_slope=0.2, exp_dtype=exp_dtype)
    return pl.pallas_call(
        kernel,
        grid_spec=pltpu.PrefetchScalarGridSpec(
            num_scalar_prefetch=1,                    # block_nnz -> SMEM
            grid=(nb, nb),
            in_specs=[
                pl.BlockSpec((tile, tile), lambda i, j, nnz: (i, j)),      # adj
                pl.BlockSpec((heads, tile, 1),
                             lambda i, j, nnz: (0, i, 0)),                 # a_dst
                pl.BlockSpec((heads, 1, tile),
                             lambda i, j, nnz: (0, 0, j)),                 # a_src
                pl.BlockSpec((heads, tile, out_ch + 1),
                             lambda i, j, nnz: (0, j, 0)),                 # h(+1s)
                pl.BlockSpec((1, out_dim), lambda i, j, nnz: (0, 0)),      # bias
            ],
            out_specs=pl.BlockSpec((tile, out_dim), lambda i, j, nnz: (i, 0)),
            scratch_shapes=[
                pltpu.VMEM((heads, tile, 1), jnp.float32),          # running max
                pltpu.VMEM((heads, tile, out_ch + 1), jnp.float32), # acc + denom
            ],
        ),
        out_shape=jax.ShapeDtypeStruct((n_pad, out_dim), out_dtype),
        compiler_params=pltpu.CompilerParams(
            dimension_semantics=("parallel", "arbitrary"),
            vmem_limit_bytes=vmem_limit),
    )(block_nnz, adj_pad, a_dst_hm, a_src_hm, h_aug,
      bias.reshape(1, out_dim).astype(jnp.float32))


# ---------------------------------------------------------------------------
# Parameters / graph helpers / forward
# ---------------------------------------------------------------------------
def _glorot(key, shape):
    fan_in, fan_out = shape[-2], shape[-1]
    limit = (6.0 / (fan_in + fan_out)) ** 0.5
    return jax.random.uniform(key, shape, jnp.float32, -limit, limit)


def init_gat_params(key, in_channels, out_channels, heads):
    ks = jax.random.split(key, 6)
    return {
        # conv1: GATConv(in_channels, out_channels, heads, concat=True)
        "w1": _glorot(ks[0], (in_channels, heads * out_channels)),
        "att_src1": _glorot(ks[1], (heads, out_channels)),
        "att_dst1": _glorot(ks[2], (heads, out_channels)),
        "bias1": jnp.zeros((heads * out_channels,), jnp.float32),
        # conv2: GATConv(out_channels*heads, out_channels, heads, concat=False)
        "w2": _glorot(ks[3], (out_channels * heads, heads * out_channels)),
        "att_src2": _glorot(ks[4], (heads, out_channels)),
        "att_dst2": _glorot(ks[5], (heads, out_channels)),
        "bias2": jnp.zeros((out_channels,), jnp.float32),
    }


def build_adj(edge_index, num_nodes, n_pad):
    # adj[i, j] = 1 iff edge j -> i (edge_index rows are [source, target]).
    # Stored int8: 4x less HBM/VMEM traffic than f32 for the N^2 stream.
    src, dst = edge_index[0], edge_index[1]
    adj = jnp.zeros((n_pad, n_pad), jnp.int8)
    adj = adj.at[dst, src].set(1)
    idx = jnp.arange(num_nodes)
    adj = adj.at[idx, idx].set(1)       # GATConv default add_self_loops=True
    return adj


def gat_forward(params, x, edge_index, edge_weights, *, out_channels, heads):
    # edge_weights accepted for signature parity but ignored: GATConv with
    # edge_dim=None never uses edge_attr, matching the PyTorch module exactly.
    del edge_weights
    n = x.shape[0]
    tile, vmem_limit, exp_dtype = _chip_plan()
    if n <= tile:
        n_pad = max(_round_up(n, 8), 8)
        tile = n_pad
    else:
        n_pad = _round_up(n, tile)
    nb = n_pad // tile

    adj = build_adj(edge_index, n, n_pad)
    # Per-(dst-block, src-block) edge counts for the in-kernel sparsity skip.
    block_nnz = adj.astype(jnp.int32).reshape(nb, tile, nb, tile).sum(axis=(1, 3))
    x_pad = jnp.pad(x, ((0, n_pad - n), (0, 0))) if n_pad != n else x

    h = gat_conv(x_pad, adj, block_nnz, params["w1"], params["att_src1"],
                 params["att_dst1"], params["bias1"], heads=heads,
                 out_ch=out_channels, concat=True, apply_elu=True,      # F.elu fused
                 tile=tile, vmem_limit=vmem_limit, exp_dtype=exp_dtype,
                 out_dtype=jnp.bfloat16)   # bf16 intermediate: half the HBM traffic
    out = gat_conv(h, adj, block_nnz, params["w2"], params["att_src2"],
                   params["att_dst2"], params["bias2"], heads=heads,
                   out_ch=out_channels, concat=False, apply_elu=False,
                   tile=tile, vmem_limit=vmem_limit, exp_dtype=exp_dtype,
                   out_dtype=jnp.float32)
    return out[:n]


if __name__ == "__main__":
    N = 16            # nodes
    IN_CH = 8
    OUT_CH = 8
    HEADS = 2
    E = 40            # edges

    key = jax.random.PRNGKey(0)
    k_x, k_src, k_dst, k_w, k_p = jax.random.split(key, 5)

    x = jax.random.normal(k_x, (N, IN_CH), jnp.float32)
    src = jax.random.randint(k_src, (E,), 0, N)
    dst = jax.random.randint(k_dst, (E,), 0, N)
    edge_index = jnp.stack([src, dst], axis=0)                 # [2, E]
    edge_weights = jax.random.uniform(k_w, (E,), jnp.float32)  # ignored by GATConv

    params = init_gat_params(k_p, IN_CH, OUT_CH, HEADS)

    out = gat_forward(params, x, edge_index, edge_weights,
                      out_channels=OUT_CH, heads=HEADS)
    out = jax.block_until_ready(out)
    assert out.shape == (N, OUT_CH), out.shape
    assert bool(jnp.all(jnp.isfinite(out)))
    print("KERNEL_OK")
</pallas_src>

<mosaic_0001>
module attributes {stable_mosaic.version = 11 : i64} {
  func.func @_proj_kernel(%arg0: i32, %arg1: memref<16x8xbf16, #tpu.memory_space<vmem>>, %arg2: memref<8x20xbf16, #tpu.memory_space<vmem>>, %arg3: memref<16x16xbf16, #tpu.memory_space<vmem>>, %arg4: memref<16x4xf32, #tpu.memory_space<vmem>>) attributes {dimension_semantics = [#tpu.dimension_semantics<parallel>], iteration_bounds = array<i64: 1>, scalar_prefetch = 0 : i64, scratch_operands = 0 : i64, tpu.core_type = #tpu.core_type<tc>, window_params = [{transform_indices = @transform_0, window_bounds = array<i64: 16, 8>}, {pipeline_mode = #tpu.pipeline_mode<synchronous>, transform_indices = @transform_1, window_bounds = array<i64: 8, 20>}, {transform_indices = @transform_2, window_bounds = array<i64: 16, 16>}, {transform_indices = @transform_3, window_bounds = array<i64: 16, 4>}]} {
    %c0 = arith.constant 0 : index
    %c0_0 = arith.constant 0 : index
    %0 = vector.load %arg1[%c0, %c0_0] : memref<16x8xbf16, #tpu.memory_space<vmem>>, vector<16x8xbf16>
    %c0_1 = arith.constant 0 : index
    %c0_2 = arith.constant 0 : index
    %1 = vector.load %arg2[%c0_1, %c0_2] : memref<8x20xbf16, #tpu.memory_space<vmem>>, vector<8x20xbf16>
    %cst = arith.constant dense<0.000000e+00> : vector<16x20xf32>
    %2 = tpu.matmul %0, %1, %cst {dimension_numbers = #tpu.dot_dimension_numbers<[1], [0], [0], [1], [0, 0, 1, 1], [], []>} : vector<16x8xbf16>, vector<8x20xbf16>, vector<16x20xf32> -> vector<16x20xf32>
    %3 = vector.extract_strided_slice %2 {offsets = [0, 0], sizes = [16, 16], strides = [1, 1]} : vector<16x20xf32> to vector<16x16xf32>
    %4 = arith.truncf %3 : vector<16x16xf32> to vector<16x16xbf16>
    %c0_3 = arith.constant 0 : index
    %c0_4 = arith.constant 0 : index
    %5 = vector.load %arg3[%c0_3, %c0_4] : memref<16x16xbf16, #tpu.memory_space<vmem>>, vector<16x16xbf16>
    tpu.vector_store %arg3[%c0_3, %c0_4], %4 {strides = array<i32>} : memref<16x16xbf16, #tpu.memory_space<vmem>>, vector<16x16xbf16>,
    %6 = vector.extract_strided_slice %2 {offsets = [0, 16], sizes = [16, 4], strides = [1, 1]} : vector<16x20xf32> to vector<16x4xf32>
    %c0_5 = arith.constant 0 : index
    %c0_6 = arith.constant 0 : index
    %7 = vector.load %arg4[%c0_5, %c0_6] : memref<16x4xf32, #tpu.memory_space<vmem>>, vector<16x4xf32>
    tpu.vector_store %arg4[%c0_5, %c0_6], %6 {strides = array<i32>} : memref<16x4xf32, #tpu.memory_space<vmem>>, vector<16x4xf32>,
    return
  }
  func.func @transform_0(%arg0: i32) -> (i32, i32) {
    %c0_i32 = arith.constant 0 : i32
    %c0_i32_0 = arith.constant 0 : i32
    return %arg0, %c0_i32 : i32, i32
  }
  func.func @transform_1(%arg0: i32) -> (i32, i32) {
    %c0_i32 = arith.constant 0 : i32
    %c0_i32_0 = arith.constant 0 : i32
    %c0_i32_1 = arith.constant 0 : i32
    return %c0_i32, %c0_i32_0 : i32, i32
  }
  func.func @transform_2(%arg0: i32) -> (i32, i32) {
    %c0_i32 = arith.constant 0 : i32
    %c0_i32_0 = arith.constant 0 : i32
    return %arg0, %c0_i32 : i32, i32
  }
  func.func @transform_3(%arg0: i32) -> (i32, i32) {
    %c0_i32 = arith.constant 0 : i32
    %c0_i32_0 = arith.constant 0 : i32
    return %arg0, %c0_i32 : i32, i32
  }
}

</mosaic_0001>

<bundles_post_ra>
// kernel: tpu_custom_call.1
= control target key start
LH: loop header
LB: loop body
LE: loop exit
PB: predicated region body
PF: predicated region fallthrough
CT: control target
= control target key end

     0   :  { %vm27_vm0 = vcmask 1043456   ;;  %v159_v1 = vmov 0.0   ;;  %vm160_vm1 = vmmov 0   ;;  %vm23_vm2 = vcmask 64512   ;;  %s209_s0 = inlined_call_operand.vmem [shape: bf16[16,8], index: 0, kind: input, shape index: {}]   ;;  %s210_s1 = inlined_call_operand.vmem [shape: bf16[8,20], index: 1, kind: input, shape index: {}]   ;;  %s211_s2 = inlined_call_operand.hbm [shape: bf16[16,16], index: 2, kind: output, shape index: {0}]   ;;  %s212_s3 = inlined_call_operand.vmem [shape: f32[16,4], index: 3, kind: output, shape index: {1}]  }
   0x1   :  { %v17_v0 = vld [vmem:[%s210_s1] sm:$0xf]  ;;  %122 = vmatprep.subr.bf16.mxu0 %v159_v1  ;;  %124 = vmatprep.mubr.msk.bf16.mxu0 %vm160_vm1, %v159_v1 }
   0x2   :  { %v29_v2 = vsel %vm27_vm0, %v17_v0, 0  ;;  %v134_v3 = vld [vmem:[%s209_s0] sm:$0xff]  }
   0x3   :  { %123 = vmatpush3.bf16.msra.mxu0 %v29_v2 }
   0x4   :  { %9 = vsyncpa [#allocation3], 0  ;;  %s161_s16 = smov [#allocation2]   ;;  %vm80_vm3 = vcmask 125952   ;;  %s162_s1 = smov 112  }
   0x5   :  { %s99_s17 = sshll.u32 %s161_s16, 4  ;;  %s100_s17 = int_to_ptr.vmem [resolvable:$true] %s99_s17 }
   0x6   :  { %125 = vmatmul.mubr.msk.bf16.vlgmr.msra.gmra.mrb[0].mxu0 %vm23_vm2, %v134_v3  ;;  %s135_s0 = scalar_lea.vmem %s100_s17, 128  ;;  %p140_p1 = scmp.lt.s32.totalorder %s100_s17, %s100_s17 }
   0x7   :  { %p136_p0 = scmp.ne.s32.totalorder %s100_s17, %s135_s0  ;;  %p141_p2 = scmp.lt.s32.totalorder %s135_s0, %s135_s0 }
   0x9   :  { %p142_p3 = por %p141_p2, %p140_p1 }
   0xb   :  { %p143_p4 = pnand %p142_p3, %p136_p0 }
  0xd9   :  { %v65_v4 = vpop.f32.mrb[0].mxu0 }
  0xda   :  { %v118_v5 = vpack.c.bf16 %v65_v4, %v65_v4  ;;  %85 = vrot.lane.b32.xlu0 %v65_v4, %s162_s1  ;;  %v126_v6 = vpop.f32.mrb[1].mxu0 }
  0xdb   :  { %v68_v7 = vpop.f32.mrb[2].mxu0 }
  0xdc   :  { %81 = vst.msk [vmem:[#allocation2] sm:$0xf] %vm80_vm3, %v118_v5  ;;  %v119_v8 = vpack.c.bf16 %v68_v7, %v68_v7  ;;  %v127_v9 = vpop.f32.mrb[3].mxu0 }
  0xde   :  { %82 = vst.msk [vmem:[#allocation2 + $0x4] sm:$0xf] %vm80_vm3, %v119_v8  ;;  %87 = vrot.lane.b32.xlu0 %v68_v7, %s162_s1 }
  0xdf   :  { %146 = shalt.err (!%p143_p4)
}
  0xe0   :  { %s147_s20 = scalar_lea.hbm %s211_s2, 128 }
  0xe1   :  { %p148_p5 = scmp.ne.s32.totalorder %s211_s2, %s147_s20  ;;  %p151_p6 = scmp.lt.u32.totalorder %s147_s20, %s211_s2 }
  0xe3   :  { %p153_p7 = pnand %p151_p6, %p148_p5 }
  0xe5   :  { %156 = shalt.err (!%p153_p7)
}
  0xe6   :  { %s163_s25 = smov 64   ;;  %s164_s26 = smov 4   ;;  %vm91_vm4 = vcmask 31744  }
  0xe7   :  { %105 = dma.vmem_to_hbm [thread:$0]  %s100_s17, 128, %s211_s2, [#allocation3], %s163_s25, %s163_s25, %s164_s26  }
 0x14c   :  { %v86_v10 = vpop.permute.xlu0 %85 }
 0x14d   :  { %92 = vst.msk [vmem:[%s212_s3] sm:$0xff] %vm91_vm4, %v86_v10 }
 0x150   :  { %v88_v11 = vpop.permute.xlu0 %87 }
 0x151   :  { %93 = vst.msk [vmem:[%s212_s3 + $0x8] sm:$0xff] %vm91_vm4, %v88_v11 }
 0x152   :  { %157 = dma.done.wait [#allocation3], 128  }
 0x153   :  { %158 = vsyncadd [#allocation3], 4294967168 }
 0x154   :  { %113 = vsyncpa [#allocation3], 1 }

</bundles_post_ra>
